<compile_context>
chip_gen: v7x
topology: tpu7x:2x2x1
jax: 0.10.0
libtpu: 0.0.40
codegen_flags: <defaults>
</compile_context>

<pallas_src>
import math
import jax
import jax.numpy as jnp
from jax.experimental import pallas as pl
from jax.experimental.pallas import tpu as pltpu


# ---------------------------------------------------------------------------
# PE table generation (plain JAX glue, mirrors PositionalEncoding.generate_pe)
# ---------------------------------------------------------------------------
def generate_pe(pos_dim, max_len=500):
    position = jnp.arange(0, max_len, dtype=jnp.float32)[:, None]            # (L, 1)
    div_term = jnp.exp(
        jnp.arange(0, pos_dim, 2, dtype=jnp.float32) * -(math.log(10000.0) / pos_dim)
    )                                                                         # (ceil(D/2),)
    pe = jnp.zeros((max_len, pos_dim), dtype=jnp.float32)
    pe = pe.at[:, 0::2].set(jnp.sin(position * div_term))
    # Truncate the cos half so odd pos_dim does not shape-mismatch
    # (the PyTorch original has the same latent bug; even dims are identical).
    pe = pe.at[:, 1::2].set(jnp.cos(position * div_term)[:, : pos_dim // 2])
    return pe                                                                 # (max_len, pos_dim)


# ---------------------------------------------------------------------------
# Chip introspection (best-effort, safe fallbacks)
# ---------------------------------------------------------------------------
def _device_kind_lower():
    try:
        return jax.devices()[0].device_kind.lower()
    except Exception:
        return ""


def _num_tensorcores():
    """TensorCores per chip: 2 on v7x, 1 on v5e/v6e.  Best-effort query."""
    try:
        info = pltpu.get_tpu_info()
        for attr in ("num_cores", "num_tensorcores", "tensorcore_count", "cores_per_chip"):
            n = getattr(info, attr, None)
            if isinstance(n, int) and n > 0:
                return n
    except Exception:
        pass
    kind = _device_kind_lower()
    if "v7" in kind:
        return 2
    return 1


def _has_bf16_valu():
    """v6e/v7x have a bf16 VPU; v5e (and older) do not."""
    kind = _device_kind_lower()
    if not kind:
        return False
    for old in ("v2", "v3", "v4", "v5"):
        if old in kind:
            return False
    return True


# ---------------------------------------------------------------------------
# Pallas kernel: lane-dense broadcast add of one PE row onto a block of rows
# ---------------------------------------------------------------------------
def _add_pe_kernel(x_ref, pe_ref, o_ref):
    # x_ref: (TR, Ct) input dtype, pe_ref: (1, Ct).
    # If the PE row was passed in the same dtype (bf16-native path on
    # v6e/v7x, or plain f32 inputs), add natively; otherwise accumulate in
    # f32 (v5e has no bf16 VPU) and cast back on store.
    if x_ref.dtype == pe_ref.dtype:
        o_ref[...] = x_ref[...] + pe_ref[...]
    else:
        x = x_ref[...].astype(jnp.float32)
        o_ref[...] = (x + pe_ref[...].astype(jnp.float32)).astype(o_ref.dtype)


def _pick_block(M, C, itemsize, target_bytes=2 << 20, num_cores=1):
    """Pick (rows, cols) block shape.

    Row tile: multiple of 8 (sublane) or == M.  Col tile: multiple of 128
    (lane) or == C.  Blocks target ~target_bytes; C is kept whole (lane-dense
    full rows) unless even a minimal row slab exceeds the target, in which
    case C is tiled too (fixes the small-M / huge-C path).  The >= num_cores
    grid-step split is applied only on multi-TC chips (v7x).
    """
    min_rows = M if M <= 8 else 8
    row_bytes = C * itemsize

    if min_rows * row_bytes <= target_bytes:
        # Whole rows fit within the target -> single column tile, grow rows.
        cols = C
        if M <= 8:
            rows = M
        else:
            rows = max(8, (target_bytes // row_bytes) // 8 * 8)
            rows = min(rows, M)
            # Only force a split for multi-TensorCore chips (v7x); on v5e/v6e
            # the extra grid step is pure per-step overhead.
            if num_cores >= 2 and rows >= M and M >= 16:
                rows = max(8, ((pl.cdiv(M, num_cores) + 7) // 8) * 8)
                rows = min(rows, M)
    else:
        # Even a minimal row slab is too big: tile the C axis as well.
        rows = min_rows
        cols = max(128, (target_bytes // (rows * itemsize)) // 128 * 128)
        if cols >= C:
            cols = C
    return rows, cols


def add_positional_encoding(x2d, pe_row, *, target_bytes=2 << 20):
    """x2d: (M, C) float dtype, pe_row: (1, C) -> (M, C) in x2d.dtype."""
    M, C = x2d.shape
    assert pe_row.shape == (1, C)
    itemsize = jnp.dtype(x2d.dtype).itemsize
    rows, cols = _pick_block(M, C, itemsize, target_bytes=target_bytes,
                             num_cores=_num_tensorcores())
    grid = (pl.cdiv(M, rows), pl.cdiv(C, cols))

    cost = pl.CostEstimate(
        flops=M * C,
        transcendentals=0,
        bytes_accessed=2 * M * C * itemsize + C * jnp.dtype(pe_row.dtype).itemsize,
    )

    return pl.pallas_call(
        _add_pe_kernel,
        out_shape=jax.ShapeDtypeStruct((M, C), x2d.dtype),
        grid_spec=pltpu.PrefetchScalarGridSpec(
            num_scalar_prefetch=0,
            grid=grid,
            in_specs=[
                pl.BlockSpec((rows, cols), lambda i, j: (i, j)),
                pl.BlockSpec((1, cols), lambda i, j: (0, j)),   # PE row tile
            ],
            out_specs=pl.BlockSpec((rows, cols), lambda i, j: (i, j)),
        ),
        compiler_params=pltpu.CompilerParams(
            dimension_semantics=("parallel", "parallel"),
            vmem_limit_bytes=32 * 1024 * 1024,  # safe on v7x (64 MiB physical)
        ),
        cost_estimate=cost,
    )(x2d, pe_row)


# ---------------------------------------------------------------------------
# Module wrapper replicating forward() dispatch semantics
# ---------------------------------------------------------------------------
class PositionalEncoding:
    def __init__(self, emb_dim, hidden_dim, dropout_ratio=0.1, max_len=500):
        self.emb_dim = emb_dim
        self.hidden_dim = hidden_dim
        self.dropout_ratio = dropout_ratio
        self.sequence_pe = generate_pe(emb_dim, max_len)    # (max_len, emb_dim)
        self.context_pe = generate_pe(hidden_dim, max_len)  # (max_len, hidden_dim)
        self._bf16_native = _has_bf16_valu()

    def _pe_dtype_for(self, x_dtype):
        # bf16-native add on v6e/v7x; f32-accumulate path everywhere else.
        if x_dtype == jnp.float32:
            return jnp.float32
        if x_dtype == jnp.bfloat16 and self._bf16_native:
            return jnp.bfloat16
        return jnp.float32

    def __call__(self, x):
        pe_dtype = self._pe_dtype_for(x.dtype)
        if x.ndim == 4 and x.shape[-1] == self.emb_dim:
            b, sn, sl, d = x.shape
            pe = self.sequence_pe[:sl].reshape(1, sl * d).astype(pe_dtype)
            out = add_positional_encoding(x.reshape(b * sn, sl * d), pe)
            out = out.reshape(b, sn, sl, d)
        elif x.ndim == 3 and x.shape[-1] == self.hidden_dim:
            b, l, d = x.shape
            pe = self.context_pe[:l].reshape(1, l * d).astype(pe_dtype)
            out = add_positional_encoding(x.reshape(b, l * d), pe).reshape(b, l, d)
        elif x.ndim == 3 and x.shape[-1] == self.emb_dim:
            b, l, d = x.shape
            pe = self.sequence_pe[:l].reshape(1, l * d).astype(pe_dtype)
            out = add_positional_encoding(x.reshape(b, l * d), pe).reshape(b, l, d)
        else:
            out = x
        # dropout in eval mode == identity
        return out


# ---------------------------------------------------------------------------
# Pure-JAX reference for correctness check
# ---------------------------------------------------------------------------
def ref_forward(module, x):
    xf = x.astype(jnp.float32)
    if x.ndim == 4 and x.shape[-1] == module.emb_dim:
        out = xf + module.sequence_pe[: x.shape[2]][None, None, :, :]
    elif x.ndim == 3 and x.shape[-1] == module.hidden_dim:
        out = xf + module.context_pe[: x.shape[1]][None, :, :]
    elif x.ndim == 3 and x.shape[-1] == module.emb_dim:
        out = xf + module.sequence_pe[: x.shape[1]][None, :, :]
    else:
        out = xf
    return out.astype(x.dtype)


if __name__ == "__main__":
    key = jax.random.PRNGKey(0)
    emb_dim, hidden_dim = 32, 64
    pe_mod = PositionalEncoding(emb_dim=emb_dim, hidden_dim=hidden_dim, dropout_ratio=0.1)

    k1, k2, k3, k4, k5 = jax.random.split(key, 5)

    # 4-D case: (batch, seq_num, seq_len, emb_dim) -> M=8, C=256
    x4 = jax.random.normal(k1, (2, 4, 8, emb_dim), dtype=jnp.float32)
    y4 = jax.block_until_ready(pe_mod(x4))
    assert y4.shape == x4.shape
    assert jnp.allclose(y4, ref_forward(pe_mod, x4), atol=1e-5)

    # 4-D case with non-divisible M: M = 3*7 = 21 rows -> masked tail block
    x4b = jax.random.normal(k2, (3, 7, 8, emb_dim), dtype=jnp.float32)
    y4b = jax.block_until_ready(pe_mod(x4b))
    assert y4b.shape == x4b.shape
    assert jnp.allclose(y4b, ref_forward(pe_mod, x4b), atol=1e-5)

    # 3-D case: (batch, length, hidden_dim)
    x3 = jax.random.normal(k3, (2, 8, hidden_dim), dtype=jnp.float32)
    y3 = jax.block_until_ready(pe_mod(x3))
    assert y3.shape == x3.shape
    assert jnp.allclose(y3, ref_forward(pe_mod, x3), atol=1e-5)

    # 3-D bf16 case: dtype preserved (bf16-native add on v6e/v7x, f32 on v5e)
    x3b = jax.random.normal(k4, (2, 8, hidden_dim), dtype=jnp.float32).astype(jnp.bfloat16)
    y3b = jax.block_until_ready(pe_mod(x3b))
    assert y3b.shape == x3b.shape and y3b.dtype == jnp.bfloat16
    assert jnp.allclose(
        y3b.astype(jnp.float32), ref_forward(pe_mod, x3b).astype(jnp.float32), atol=5e-2
    )

    # Exercise the new C-tiling path (small M, forced tiny block-size target):
    # M=2, C=512 f32 with a 2 KiB target -> (rows=2, cols=256), grid (1, 2).
    x3c = jax.random.normal(k5, (2, 8, hidden_dim), dtype=jnp.float32)
    pe_c = pe_mod.context_pe[:8].reshape(1, 8 * hidden_dim)
    y3c = add_positional_encoding(x3c.reshape(2, 8 * hidden_dim), pe_c,
                                  target_bytes=2048).reshape(2, 8, hidden_dim)
    y3c = jax.block_until_ready(y3c)
    assert jnp.allclose(y3c, ref_forward(pe_mod, x3c), atol=1e-5)

    print("KERNEL_OK")
</pallas_src>

<mosaic_0001>
module attributes {stable_mosaic.version = 11 : i64} {
  func.func @_add_pe_kernel(%arg0: i32, %arg1: i32, %arg2: memref<8x256xf32, #tpu.memory_space<vmem>>, %arg3: memref<1x256xf32, #tpu.memory_space<vmem>>, %arg4: memref<8x256xf32, #tpu.memory_space<vmem>>) attributes {dimension_semantics = [#tpu.dimension_semantics<parallel>, #tpu.dimension_semantics<parallel>], iteration_bounds = array<i64: 1, 1>, scalar_prefetch = 0 : i64, scratch_operands = 0 : i64, tpu.core_type = #tpu.core_type<tc>, window_params = [{transform_indices = @transform_0, window_bounds = array<i64: 8, 256>}, {transform_indices = @transform_1, window_bounds = array<i64: 1, 256>}, {transform_indices = @transform_2, window_bounds = array<i64: 8, 256>}]} {
    %c0 = arith.constant 0 : index
    %c0_0 = arith.constant 0 : index
    %0 = vector.load %arg2[%c0, %c0_0] : memref<8x256xf32, #tpu.memory_space<vmem>>, vector<8x256xf32>
    %c0_1 = arith.constant 0 : index
    %c0_2 = arith.constant 0 : index
    %1 = vector.load %arg3[%c0_1, %c0_2] : memref<1x256xf32, #tpu.memory_space<vmem>>, vector<1x256xf32>
    %2 = vector.broadcast %1 : vector<1x256xf32> to vector<8x256xf32>
    %3 = arith.addf %0, %2 : vector<8x256xf32>
    %c0_3 = arith.constant 0 : index
    %c0_4 = arith.constant 0 : index
    %4 = vector.load %arg4[%c0_3, %c0_4] : memref<8x256xf32, #tpu.memory_space<vmem>>, vector<8x256xf32>
    tpu.vector_store %arg4[%c0_3, %c0_4], %3 {strides = array<i32>} : memref<8x256xf32, #tpu.memory_space<vmem>>, vector<8x256xf32>,
    return
  }
  func.func @transform_0(%arg0: i32, %arg1: i32) -> (i32, i32) {
    %c0_i32 = arith.constant 0 : i32
    return %arg0, %arg1 : i32, i32
  }
  func.func @transform_1(%arg0: i32, %arg1: i32) -> (i32, i32) {
    %c0_i32 = arith.constant 0 : i32
    %c0_i32_0 = arith.constant 0 : i32
    return %c0_i32, %arg1 : i32, i32
  }
  func.func @transform_2(%arg0: i32, %arg1: i32) -> (i32, i32) {
    %c0_i32 = arith.constant 0 : i32
    return %arg0, %arg1 : i32, i32
  }
}

</mosaic_0001>

<bundles_post_ra>
// kernel: tpu_custom_call.1
= control target key start
LH: loop header
LB: loop body
LE: loop exit
PB: predicated region body
PF: predicated region fallthrough
CT: control target
= control target key end

     0   :  { %7 = vsyncpa [#allocation3], 0  ;;  %s151_s0 = inlined_call_operand.hbm [shape: f32[8,256], index: 0, kind: input, shape index: {}]   ;;  %s152_s1 = inlined_call_operand.vmem [shape: f32[1,256], index: 1, kind: input, shape index: {}]   ;;  %s153_s2 = inlined_call_operand.hbm [shape: f32[8,256], index: 2, kind: output, shape index: {}]  }
   0x1   :  { %8 = vsyncpa [#allocation4], 0  ;;  %s107_s9 = smov [#allocation2]   ;;  %s59_s13 = scalar_lea.hbm %s151_s0, 256 }
   0x2   :  { %s15_s10 = sshll.u32 %s107_s9, 4  ;;  %p60_p0 = scmp.ne.s32.totalorder %s151_s0, %s59_s13  ;;  %s16_s10 = int_to_ptr.vmem [resolvable:$true] %s15_s10 }
   0x3   :  { %p63_p1 = scmp.lt.u32.totalorder %s59_s13, %s151_s0 }
   0x5   :  { %p65_p2 = pnand %p63_p1, %p60_p0 }
   0x7   :  { %68 = shalt.err (!%p65_p2)
}
   0x8   :  { %s69_s18 = scalar_lea.vmem %s16_s10, 256  ;;  %p74_p4 = scmp.lt.s32.totalorder %s16_s10, %s16_s10 }
   0x9   :  { %p70_p3 = scmp.ne.s32.totalorder %s16_s10, %s69_s18  ;;  %p75_p5 = scmp.lt.s32.totalorder %s69_s18, %s69_s18 }
   0xb   :  { %p76_p6 = por %p75_p5, %p74_p4 }
   0xd   :  { %p77_p7 = pnand %p76_p6, %p70_p3 }
   0xf   :  { %80 = shalt.err (!%p77_p7)
}
  0x10   :  { %18 = dma.hbm_to_vmem [thread:$0]  %s151_s0, 256, %s16_s10, [#allocation3]  }
  0x11   :  { %103 = dma.done.wait [#allocation3], 256  }
  0x12   :  { %104 = vsyncadd [#allocation3], 4294967040  ;;  %v28_v0 = vlaneseq  ;;  %v24_v4 = vld [vmem:[#allocation2] sm:$0xff]  ;;  %v25_v6 = vld [vmem:[#allocation2 + $0x8] sm:$0xff]  ;;  %s108_s23 = smov [#allocation5]  }
  0x13   :  { %v26_v5 = vld [vmem:[%s152_s1] sm:$0x3]  ;;  %s48_s24 = sshll.u32 %s108_s23, 4  ;;  %s49_s24 = int_to_ptr.vmem [resolvable:$true] %s48_s24 }
  0x14   :  { %v29_v1 = vshrl.u32 %v28_v0, 7  ;;  %s81_s0 = scalar_lea.vmem %s49_s24, 256  ;;  %p86_p9 = scmp.lt.s32.totalorder %s49_s24, %s49_s24 }
  0x15   :  { %p82_p8 = scmp.ne.s32.totalorder %s49_s24, %s81_s0  ;;  %p87_p10 = scmp.lt.s32.totalorder %s81_s0, %s81_s0 }
  0x16   :  { %v30_v2 = vsub.s32 0, %v29_v1  ;;  %v34_v3 = vsub.s32 1, %v29_v1 }
  0x17   :  { %p88_p11 = por %p87_p10, %p86_p9 }
  0x18   :  { %v31_v7 = vrot.slane %v26_v5, %v30_v2  ;;  %v35_v8 = vrot.slane %v26_v5, %v34_v3 }
  0x19   :  { %p89_p12 = pnand %p88_p11, %p82_p8 }
  0x1a   :  { %v38_v9 = vadd.f32 %v31_v7, %v24_v4  ;;  %v39_v10 = vadd.f32 %v35_v8, %v25_v6 }
  0x1c   :  { %40 = vst [vmem:[#allocation5] sm:$0xff] %v38_v9  ;;  %41 = vst [vmem:[#allocation5 + $0x8] sm:$0xff] %v39_v10 }
  0x1d   :  { %92 = shalt.err (!%p89_p12)
}
  0x1e   :  { %s93_s1 = scalar_lea.hbm %s153_s2, 256 }
  0x1f   :  { %p94_p13 = scmp.ne.s32.totalorder %s153_s2, %s93_s1  ;;  %p97_p0 = scmp.lt.u32.totalorder %s93_s1, %s153_s2 }
  0x21   :  { %p99_p1 = pnand %p97_p0, %p94_p13 }
  0x23   :  { %102 = shalt.err (!%p99_p1)
}
  0x24   :  { %51 = dma.vmem_to_hbm [thread:$0]  %s49_s24, 256, %s153_s2, [#allocation4]  }
  0x25   :  { %105 = dma.done.wait [#allocation4], 256  }
  0x26   :  { %106 = vsyncadd [#allocation4], 4294967040 }
  0x27   :  { %55 = vsyncpa [#allocation3], 1 }
  0x28   :  { %56 = vsyncpa [#allocation4], 1 }

</bundles_post_ra>
